<compile_context>
chip_gen: v7x
topology: tpu7x:2x2x1
jax: 0.10.0
libtpu: 0.0.40
codegen_flags: <defaults>
</compile_context>

<pallas_src>
import jax
import jax.numpy as jnp
from jax.experimental import pallas as pl
from jax.experimental.pallas import tpu as pltpu


def _round_up(x: int, m: int) -> int:
    return ((x + m - 1) // m) * m


def _cdiv(a: int, b: int) -> int:
    return -(-a // b)


def classifier_kernel(x_ref, w_ref, b_ref, o_ref):
    # ReLU in the native dtype (exact for f32/bf16), fused with the MXU matmul
    # and bias add; accumulate in f32 on the MXU.
    x = jnp.maximum(x_ref[...], 0)
    acc = jnp.dot(x, w_ref[...], preferred_element_type=jnp.float32)
    o_ref[...] = (acc + b_ref[...].astype(jnp.float32)).astype(o_ref.dtype)


_MAX_TILE_B = 16384   # ~3 MiB of f32 x rows at C_in=32 -> step overhead amortized
_MIN_TILE_B = 8


def _vmem_budget_bytes() -> int:
    # Generation-aware budget: v5e/v6e have 128 MiB physical VMEM, v7x only
    # 64 MiB (32 MiB default scoped).  Stay within ~half the physical capacity.
    try:
        cap = pltpu.get_tpu_info().vmem_capacity_bytes
    except Exception:
        cap = 64 * 1024 * 1024  # conservative (v7x-sized) fallback
    return max(16 * 1024 * 1024, cap // 2)


def _pick_tiling(B: int, C_in: int, C_out: int, x_itemsize: int, w_itemsize: int):
    """Returns (tile_b, n_steps, vmem_limit_bytes)."""
    # Resident weight + bias (Pallas double-buffers them even though the
    # constant index_map means they are only DMA'd once).
    resident = 2 * (C_in * C_out + C_out) * w_itemsize
    # Double-buffered x tile + out tile, per row.
    per_row = 2 * (C_in + C_out) * x_itemsize

    budget = _vmem_budget_bytes()
    tile_cap = max(_MIN_TILE_B, ((budget - resident) // per_row) // 8 * 8)
    tile_cap = min(tile_cap, _MAX_TILE_B)

    b8 = _round_up(B, 8)
    n_steps = _cdiv(b8, tile_cap)
    # Guarantee >=2 balanced steps when B is large so both v7x TensorCores
    # get work (dimension_semantics=("parallel",)); harmless on v5e/v6e.
    if b8 >= 2048 and n_steps < 2:
        n_steps = 2
    tile_b = max(_MIN_TILE_B, _round_up(_cdiv(b8, n_steps), 8))
    n_steps = _cdiv(b8, tile_b)

    working_set = 2 * tile_b * (C_in + C_out) * x_itemsize + resident
    vmem_limit = working_set + 8 * 1024 * 1024
    return tile_b, n_steps, vmem_limit


def classifier_forward(x, w, b):
    """x: [B, C_in], w: [C_in, C_out], b: [C_out] -> [B, C_out].

    Computes Linear(ReLU(x)) with f32 accumulation (f32 or bf16 activations).
    """
    B, C_in = x.shape
    C_out = w.shape[1]
    dtype = x.dtype
    x_itemsize = jnp.dtype(dtype).itemsize
    w_itemsize = jnp.dtype(w.dtype).itemsize

    tile_b, n_steps, vmem_limit = _pick_tiling(B, C_in, C_out, x_itemsize, w_itemsize)
    b_total = n_steps * tile_b

    # Batch rounding only (no feature-dim padding). Padding rows are zeros and
    # are sliced off afterwards; at most a few rows per grid step.
    x_in = x if b_total == B else jnp.pad(x, ((0, b_total - B), (0, 0)))
    bias2d = b.reshape(1, C_out)

    out = pl.pallas_call(
        classifier_kernel,
        out_shape=jax.ShapeDtypeStruct((b_total, C_out), dtype),
        grid_spec=pltpu.PrefetchScalarGridSpec(
            num_scalar_prefetch=0,
            grid=(n_steps,),
            in_specs=[
                pl.BlockSpec((tile_b, C_in), lambda i: (i, 0)),   # x tile
                pl.BlockSpec((C_in, C_out), lambda i: (0, 0)),    # W resident
                pl.BlockSpec((1, C_out), lambda i: (0, 0)),       # bias resident
            ],
            out_specs=pl.BlockSpec((tile_b, C_out), lambda i: (i, 0)),
        ),
        compiler_params=pltpu.CompilerParams(
            dimension_semantics=("parallel",),
            vmem_limit_bytes=vmem_limit,
        ),
        cost_estimate=pl.CostEstimate(
            flops=2 * B * C_in * C_out,
            transcendentals=0,
            bytes_accessed=(B * C_in + B * C_out) * x_itemsize
            + (C_in * C_out + C_out) * w_itemsize,
        ),
    )(x_in, w, bias2d)

    return out if b_total == B else out[:B]


if __name__ == "__main__":
    # Small shapes consistent with the module: Classifier(in_channel=32, out_channel=16)
    B, C_in, C_out = 8, 32, 16

    key = jax.random.PRNGKey(0)
    kx, kw, kb = jax.random.split(key, 3)

    x = jax.random.normal(kx, (B, C_in), dtype=jnp.float32)

    # Deterministic parameter init (matches nn.Linear's uniform(+-1/sqrt(in)) range).
    bound = 1.0 / jnp.sqrt(jnp.float32(C_in))
    w = jax.random.uniform(kw, (C_in, C_out), minval=-bound, maxval=bound, dtype=jnp.float32)
    b = jax.random.uniform(kb, (C_out,), minval=-bound, maxval=bound, dtype=jnp.float32)

    out = classifier_forward(x, w, b)
    jax.block_until_ready(out)

    # Reference check in plain JAX (same math as nn.Sequential(ReLU, Linear)).
    ref = jnp.maximum(x, 0.0) @ w + b
    assert out.shape == (B, C_out)
    assert jnp.allclose(out, ref, atol=1e-5, rtol=1e-5)

    print("KERNEL_OK")
</pallas_src>

<mosaic_0001>
module attributes {stable_mosaic.version = 11 : i64} {
  func.func @classifier_kernel(%arg0: i32, %arg1: memref<8x32xf32, #tpu.memory_space<vmem>>, %arg2: memref<32x16xf32, #tpu.memory_space<vmem>>, %arg3: memref<1x16xf32, #tpu.memory_space<vmem>>, %arg4: memref<8x16xf32, #tpu.memory_space<vmem>>) attributes {dimension_semantics = [#tpu.dimension_semantics<parallel>], iteration_bounds = array<i64: 1>, scalar_prefetch = 0 : i64, scratch_operands = 0 : i64, tpu.core_type = #tpu.core_type<tc>, window_params = [{transform_indices = @transform_0, window_bounds = array<i64: 8, 32>}, {pipeline_mode = #tpu.pipeline_mode<synchronous>, transform_indices = @transform_1, window_bounds = array<i64: 32, 16>}, {pipeline_mode = #tpu.pipeline_mode<synchronous>, transform_indices = @transform_2, window_bounds = array<i64: 1, 16>}, {transform_indices = @transform_3, window_bounds = array<i64: 8, 16>}]} {
    %c0 = arith.constant 0 : index
    %c0_0 = arith.constant 0 : index
    %0 = vector.load %arg1[%c0, %c0_0] : memref<8x32xf32, #tpu.memory_space<vmem>>, vector<8x32xf32>
    %cst = arith.constant 0.000000e+00 : f32
    %1 = vector.broadcast %cst : f32 to vector<8x32xf32>
    %2 = arith.maximumf %0, %1 : vector<8x32xf32>
    %c0_1 = arith.constant 0 : index
    %c0_2 = arith.constant 0 : index
    %3 = vector.load %arg2[%c0_1, %c0_2] : memref<32x16xf32, #tpu.memory_space<vmem>>, vector<32x16xf32>
    %cst_3 = arith.constant dense<0.000000e+00> : vector<8x16xf32>
    %4 = tpu.matmul %2, %3, %cst_3 {dimension_numbers = #tpu.dot_dimension_numbers<[1], [0], [0], [1], [0, 0, 1, 1], [], []>} : vector<8x32xf32>, vector<32x16xf32>, vector<8x16xf32> -> vector<8x16xf32>
    %c0_4 = arith.constant 0 : index
    %c0_5 = arith.constant 0 : index
    %5 = vector.load %arg3[%c0_4, %c0_5] : memref<1x16xf32, #tpu.memory_space<vmem>>, vector<1x16xf32>
    %6 = vector.broadcast %5 : vector<1x16xf32> to vector<8x16xf32>
    %7 = arith.addf %4, %6 : vector<8x16xf32>
    %c0_6 = arith.constant 0 : index
    %c0_7 = arith.constant 0 : index
    %8 = vector.load %arg4[%c0_6, %c0_7] : memref<8x16xf32, #tpu.memory_space<vmem>>, vector<8x16xf32>
    tpu.vector_store %arg4[%c0_6, %c0_7], %7 {strides = array<i32>} : memref<8x16xf32, #tpu.memory_space<vmem>>, vector<8x16xf32>,
    return
  }
  func.func @transform_0(%arg0: i32) -> (i32, i32) {
    %c0_i32 = arith.constant 0 : i32
    %c0_i32_0 = arith.constant 0 : i32
    return %arg0, %c0_i32 : i32, i32
  }
  func.func @transform_1(%arg0: i32) -> (i32, i32) {
    %c0_i32 = arith.constant 0 : i32
    %c0_i32_0 = arith.constant 0 : i32
    %c0_i32_1 = arith.constant 0 : i32
    return %c0_i32, %c0_i32_0 : i32, i32
  }
  func.func @transform_2(%arg0: i32) -> (i32, i32) {
    %c0_i32 = arith.constant 0 : i32
    %c0_i32_0 = arith.constant 0 : i32
    %c0_i32_1 = arith.constant 0 : i32
    return %c0_i32, %c0_i32_0 : i32, i32
  }
  func.func @transform_3(%arg0: i32) -> (i32, i32) {
    %c0_i32 = arith.constant 0 : i32
    %c0_i32_0 = arith.constant 0 : i32
    return %arg0, %c0_i32 : i32, i32
  }
}

</mosaic_0001>

<bundles_post_ra>
// kernel: tpu_custom_call.1
= control target key start
LH: loop header
LB: loop body
LE: loop exit
PB: predicated region body
PF: predicated region fallthrough
CT: control target
= control target key end

     0   :  { %v170_v3 = vmov 0.0|0.0   ;;  %vm171_vm0 = vmmov 0   ;;  %v172_v6 = vmov 0.0   ;;  %s224_s0 = inlined_call_operand.vmem [shape: f32[8,32], index: 0, kind: input, shape index: {}]   ;;  %s225_s1 = inlined_call_operand.vmem [shape: f32[32,16], index: 1, kind: input, shape index: {}]   ;;  %s226_s2 = inlined_call_operand.vmem [shape: f32[1,16], index: 2, kind: input, shape index: {}]   ;;  %s227_s3 = inlined_call_operand.hbm [shape: f32[8,16], index: 3, kind: output, shape index: {}]  }
   0x1   :  { %v17_v0 = vld [vmem:[%s225_s1] sm:$0xff]  ;;  %v18_v1 = vld [vmem:[%s225_s1 + $0x8] sm:$0xff]  ;;  %v19_v2 = vld [vmem:[%s225_s1 + $0x10] sm:$0xff]  ;;  %136 = vmatprep.subr.bf16.mxu0 %v170_v3  ;;  %133 = vmatprep.mubr.msk.f32.mxu0 %vm171_vm0, %v172_v6 }
   0x2   :  { %v137_v4 = vpack.c.bf16 %v18_v1, %v17_v0  ;;  %v20_v5 = vld [vmem:[%s225_s1 + $0x18] sm:$0xff] }
   0x3   :  { %8 = vsyncpa [#allocation3], 0  ;;  %v140_v7 = vpack.c.bf16 %v20_v5, %v19_v2  ;;  %v15_v8 = vld [vmem:[%s224_s0] sm:$0xff]  ;;  %vm28_vm1 = vcmask 261120   ;;  %s173_s1 = smov [#allocation2]   ;;  %vm102_vm2 = vcmask 130048  }
   0x4   :  { %138 = vmatpush3.bf16.msra.mxu0 %v137_v4  ;;  %v16_v9 = vmax.f32 %v15_v8, 0.0  ;;  %v118_v10 = vld [vmem:[%s226_s2] ss:$0 sm:$0xff]  ;;  %s110_s24 = sshll.u32 %s173_s1, 4  ;;  %s111_s24 = int_to_ptr.vmem [resolvable:$true] %s110_s24 }
   0x5   :  { %139 = vmatprep.subr.bf16.mxu0 %v170_v3  ;;  %s146_s25 = scalar_lea.vmem %s111_s24, 128  ;;  %p151_p1 = scmp.lt.s32.totalorder %s111_s24, %s111_s24 }
   0x6   :  { %p147_p0 = scmp.ne.s32.totalorder %s111_s24, %s146_s25  ;;  %p152_p2 = scmp.lt.s32.totalorder %s146_s25, %s146_s25 }
   0x8   :  { %141 = vmatpush3.bf16.msra.mxu0 %v140_v7  ;;  %p153_p3 = por %p152_p2, %p151_p1 }
   0xa   :  { %p154_p4 = pnand %p153_p3, %p147_p0 }
   0xb   :  { %134 = vmatmul.mubr.msk.f32.vlgmr.msra.gmra.mrb[0].mxu0 %vm28_vm1, %v16_v9 }
  0xde   :  { %v98_v11 = vpop.f32.mrb[0].mxu0 }
  0xdf   :  { %v99_v12 = vadd.f32 %v118_v10, %v98_v11  ;;  %v135_v13 = vpop.f32.mrb[1].mxu0 }
  0xe1   :  { %103 = vst.msk [vmem:[#allocation2] sm:$0xff] %vm102_vm2, %v99_v12 }
  0xe2   :  { %157 = shalt.err (!%p154_p4)
}
  0xe3   :  { %s158_s27 = scalar_lea.hbm %s227_s3, 128 }
  0xe4   :  { %p159_p5 = scmp.ne.s32.totalorder %s227_s3, %s158_s27  ;;  %p162_p6 = scmp.lt.u32.totalorder %s158_s27, %s227_s3 }
  0xe6   :  { %p164_p7 = pnand %p162_p6, %p159_p5 }
  0xe8   :  { %167 = shalt.err (!%p164_p7)
}
  0xe9   :  { %113 = dma.vmem_to_hbm [thread:$0]  %s111_s24, 128, %s227_s3, [#allocation3]  }
  0xea   :  { %168 = dma.done.wait [#allocation3], 128  }
  0xeb   :  { %169 = vsyncadd [#allocation3], 4294967168 }
  0xec   :  { %117 = vsyncpa [#allocation3], 1 }

</bundles_post_ra>
